<compile_context>
chip_gen: v7x
topology: tpu7x:2x2x1
jax: 0.10.0
libtpu: 0.0.40
codegen_flags: <defaults>
</compile_context>

<pallas_src>
import functools

import jax
import jax.numpy as jnp
from jax.experimental import pallas as pl
from jax.experimental.pallas import tpu as pltpu


def _round_up(x, m):
    return ((x + m - 1) // m) * m


def _choose_tile_b(batch, requested):
    """Lane-aligned batch tile.

    As large as requested (amortizes the ~0.35 us per-grid-step overhead), but
    prefers an EVEN number of >= 2 grid steps so both v7x TensorCores get a
    share of the ("parallel",) batch axis.
    """
    if batch <= 128:
        return batch                       # single block; dims equal array extents
    cap = _round_up(batch, 128)
    tile = max(128, min((requested // 128) * 128, cap))
    steps = pl.cdiv(batch, tile)
    if steps == 1 and cap >= 256:          # split so two cores can both work
        tile = max(128, _round_up(cap // 2, 128))
        steps = pl.cdiv(batch, tile)
    if steps >= 3 and steps % 2 == 1:      # make the step count even (v7x megacore)
        for s in range(steps + 1, 2 * steps + 1):
            cand = max(128, _round_up(pl.cdiv(batch, s), 128))
            if pl.cdiv(batch, cand) % 2 == 0:
                tile = cand
                break
    return tile


def _mlp_kernel(x_ref, w_in_ref, b_in_ref, w_h_ref, b_h_ref,
                w_out_ref, b_out_ref, o_ref, *, num_hidden_layers, act_dtype):
    # Activations live as (features, batch_tile): batch on lanes, features on
    # sublanes -> lane-dense vregs for every VPU/EUP op and a lane-dense store.
    dot_kwargs = dict(preferred_element_type=jnp.float32,
                      precision=jax.lax.Precision.DEFAULT)

    x = x_ref[...].astype(act_dtype)                     # (tile_b, d_in), native layout
    # First layer: contract on x's feature axis (no transpose of x anywhere) so
    # the result is (H, tile_b) with the batch already on the lane axis.
    z = jax.lax.dot_general(w_in_ref[...], x, (((1,), (1,)), ((), ())), **dot_kwargs)
    # TODO(synk): on v5e (no bf16 EUP) a VPU rational/polynomial tanh could move
    # this off the single EUP slot; left as f32 tanh pending a bundle-dump check.
    h = jnp.tanh((z + b_in_ref[...]).astype(act_dtype))  # biases broadcast over lanes

    # Hidden layers: statically unrolled (L is small); stacked (L, H, H) weights
    # are VMEM-resident, w_h_ref[l] is a static-index slice.
    for l in range(num_hidden_layers):
        z = jnp.dot(w_h_ref[l], h, **dot_kwargs)
        h = jnp.tanh((z + b_h_ref[l]).astype(act_dtype))

    # Output layer (no activation): unmasked lane-dense (3, tile_b) store.
    o_ref[...] = (jnp.dot(w_out_ref[...], h, **dot_kwargs)
                  + b_out_ref[...]).astype(o_ref.dtype)


def ptv_nn_trans_forward(x, params, *, tile_b=4096,
                         activation_dtype=jnp.float32,
                         batch_major_output=True):
    """x: (B, 2 + 2*num_terms) -> (B, 3) float32 (or (3, B) if batch_major_output=False)."""
    w_in, b_in, w_h, b_h, w_out, b_out = params
    B, d_in = x.shape
    H = w_in.shape[0]
    L = w_h.shape[0]
    assert w_in.shape == (H, d_in) and w_out.shape == (3, H)

    act_dtype = jnp.dtype(activation_dtype)
    if act_dtype != jnp.dtype(jnp.float32):
        # bf16 MXU-native weights; biases stay f32 (added to the f32 accumulator).
        w_in = w_in.astype(act_dtype)
        w_h = w_h.astype(act_dtype)
        w_out = w_out.astype(act_dtype)

    # Degenerate L == 0: pass a dummy stack so the BlockSpec has no zero dims;
    # the unrolled loop never touches it.
    if L == 0:
        w_h = jnp.zeros((1, H, H), w_in.dtype)
        b_h = jnp.zeros((1, H, 1), b_in.dtype)
    L_stack = max(L, 1)

    tile_b = _choose_tile_b(B, tile_b)
    grid = (pl.cdiv(B, tile_b),)

    kernel = functools.partial(_mlp_kernel, num_hidden_layers=L, act_dtype=act_dtype)

    out_t = pl.pallas_call(
        kernel,
        out_shape=jax.ShapeDtypeStruct((3, B), jnp.float32),
        grid_spec=pltpu.PrefetchScalarGridSpec(
            num_scalar_prefetch=0,
            grid=grid,
            in_specs=[
                pl.BlockSpec((tile_b, d_in), lambda i: (i, 0)),   # x tile, native layout
                pl.BlockSpec((H, d_in), lambda i: (0, 0)),        # W_in  (out, in)
                pl.BlockSpec((H, 1), lambda i: (0, 0)),           # b_in  (out, 1)
                pl.BlockSpec((L_stack, H, H), lambda i: (0, 0, 0)),  # W_h stack
                pl.BlockSpec((L_stack, H, 1), lambda i: (0, 0, 0)),  # b_h stack
                pl.BlockSpec((3, H), lambda i: (0, 0)),           # W_out
                pl.BlockSpec((3, 1), lambda i: (0, 0)),           # b_out
            ],
            out_specs=pl.BlockSpec((3, tile_b), lambda i: (0, i)),
        ),
        compiler_params=pltpu.CompilerParams(
            dimension_semantics=("parallel",)
        ),
    )(x, w_in, b_in, w_h, b_h, w_out, b_out)

    # PyTorch-facing (B, 3) layout; callers able to take (3, B) skip this pass.
    return out_t.T if batch_major_output else out_t


def init_params(key, num_terms, num_hidden_layers, hidden_size):
    """Deterministic synthetic parameters matching the PyTorch module shapes.

    nn.Linear(in, out) stores weight (out, in) and bias (out,).  We keep the
    (out, in) layout (the kernel computes W @ x^T) and store biases as column
    vectors (out, 1) so they broadcast across the lane (batch) axis.
    """
    d_in = 2 + 2 * num_terms
    keys = jax.random.split(key, 2 * (num_hidden_layers + 2))
    ki = iter(keys)

    def linear(kw, kb, fan_in, fan_out):
        bound = 1.0 / jnp.sqrt(jnp.float32(fan_in))
        w = jax.random.uniform(kw, (fan_out, fan_in), jnp.float32, -bound, bound)
        b = jax.random.uniform(kb, (fan_out, 1), jnp.float32, -bound, bound)
        return w, b

    w_in, b_in = linear(next(ki), next(ki), d_in, hidden_size)
    w_h_list, b_h_list = [], []
    for _ in range(num_hidden_layers):
        w, b = linear(next(ki), next(ki), hidden_size, hidden_size)
        w_h_list.append(w)
        b_h_list.append(b)
    w_h = jnp.stack(w_h_list, axis=0) if w_h_list else jnp.zeros((0, hidden_size, hidden_size), jnp.float32)
    b_h = jnp.stack(b_h_list, axis=0) if b_h_list else jnp.zeros((0, hidden_size, 1), jnp.float32)
    w_out, b_out = linear(next(ki), next(ki), hidden_size, 3)
    return w_in, b_in, w_h, b_h, w_out, b_out


def reference_forward(x, params):
    """Pure-JAX reference mirroring the PyTorch forward (x @ W^T + b)."""
    w_in, b_in, w_h, b_h, w_out, b_out = params
    h = jnp.tanh(x @ w_in.T + b_in[:, 0])
    for l in range(w_h.shape[0]):
        h = jnp.tanh(h @ w_h[l].T + b_h[l, :, 0])
    return h @ w_out.T + b_out[:, 0]


def _supports_bf16_eup():
    """bf16 transcendentals (EUP) are available on v6e / v7x; not on v5e and older."""
    try:
        kind = jax.devices()[0].device_kind.lower()
    except Exception:
        return False
    return ("v6" in kind) or ("v7" in kind) or ("7x" in kind)


if __name__ == "__main__":
    num_terms = 3            # input dim = 2 + 2*3 = 8
    num_hidden_layers = 2
    hidden_size = 32
    batch = 300              # deliberately NOT a multiple of 128: exercises the
                             # pad-free ragged last tile and the even >=2-step grid

    key = jax.random.PRNGKey(0)
    k_x, k_p = jax.random.split(key)
    x = jax.random.normal(k_x, (batch, 2 + 2 * num_terms), jnp.float32)
    params = init_params(k_p, num_terms, num_hidden_layers, hidden_size)

    ref = reference_forward(x, params)

    # Exact-semantics f32 path: tight check on every TPU generation.
    out = jax.block_until_ready(ptv_nn_trans_forward(x, params))
    assert out.shape == (batch, 3)
    assert jnp.allclose(out, ref, atol=2e-5, rtol=2e-5), "f32 kernel mismatch vs reference"

    # Perf-review lever: bf16 activation datapath (tanh on the bf16 EUP) where the
    # hardware supports it.  Same module semantics, lower-precision activations,
    # hence the looser tolerance.  Guarded so v5e (no bf16 EUP) never takes it.
    if _supports_bf16_eup():
        out_bf16 = None
        try:
            out_bf16 = jax.block_until_ready(
                ptv_nn_trans_forward(x, params, activation_dtype=jnp.bfloat16))
        except Exception as e:  # toolchain-dependent bf16 transcendental lowering
            print(f"bf16 activation path unavailable on this toolchain: {e!r}")
        if out_bf16 is not None:
            assert out_bf16.shape == (batch, 3)
            assert jnp.allclose(out_bf16, ref, atol=1e-1, rtol=1e-1), \
                "bf16 kernel mismatch vs reference"

    print("KERNEL_OK")
</pallas_src>

<mosaic_0001>
module attributes {stable_mosaic.version = 11 : i64} {
  func.func @_mlp_kernel(%arg0: i32, %arg1: memref<256x8xf32, #tpu.memory_space<vmem>>, %arg2: memref<32x8xf32, #tpu.memory_space<vmem>>, %arg3: memref<32x1xf32, #tpu.memory_space<vmem>>, %arg4: memref<2x32x32xf32, #tpu.memory_space<vmem>>, %arg5: memref<2x32x1xf32, #tpu.memory_space<vmem>>, %arg6: memref<3x32xf32, #tpu.memory_space<vmem>>, %arg7: memref<3x1xf32, #tpu.memory_space<vmem>>, %arg8: memref<3x256xf32, #tpu.memory_space<vmem>>) attributes {dimension_semantics = [#tpu.dimension_semantics<parallel>], iteration_bounds = array<i64: 2>, scalar_prefetch = 0 : i64, scratch_operands = 0 : i64, tpu.core_type = #tpu.core_type<tc>, window_params = [{transform_indices = @transform_0, window_bounds = array<i64: 256, 8>}, {pipeline_mode = #tpu.pipeline_mode<synchronous>, transform_indices = @transform_1, window_bounds = array<i64: 32, 8>}, {pipeline_mode = #tpu.pipeline_mode<synchronous>, transform_indices = @transform_2, window_bounds = array<i64: 32, 1>}, {pipeline_mode = #tpu.pipeline_mode<synchronous>, transform_indices = @transform_3, window_bounds = array<i64: 2, 32, 32>}, {pipeline_mode = #tpu.pipeline_mode<synchronous>, transform_indices = @transform_4, window_bounds = array<i64: 2, 32, 1>}, {pipeline_mode = #tpu.pipeline_mode<synchronous>, transform_indices = @transform_5, window_bounds = array<i64: 3, 32>}, {pipeline_mode = #tpu.pipeline_mode<synchronous>, transform_indices = @transform_6, window_bounds = array<i64: 3, 1>}, {transform_indices = @transform_7, window_bounds = array<i64: 3, 256>}]} {
    %c0 = arith.constant 0 : index
    %c0_0 = arith.constant 0 : index
    %0 = vector.load %arg1[%c0, %c0_0] : memref<256x8xf32, #tpu.memory_space<vmem>>, vector<256x8xf32>
    %c0_1 = arith.constant 0 : index
    %c0_2 = arith.constant 0 : index
    %1 = vector.load %arg2[%c0_1, %c0_2] : memref<32x8xf32, #tpu.memory_space<vmem>>, vector<32x8xf32>
    %cst = arith.constant dense<0.000000e+00> : vector<32x256xf32>
    %2 = tpu.matmul %1, %0, %cst {dimension_numbers = #tpu.dot_dimension_numbers<[1], [1], [0], [0], [0, 0, 1, 0], [], []>} : vector<32x8xf32>, vector<256x8xf32>, vector<32x256xf32> -> vector<32x256xf32>
    %c0_3 = arith.constant 0 : index
    %c0_4 = arith.constant 0 : index
    %3 = vector.load %arg3[%c0_3, %c0_4] : memref<32x1xf32, #tpu.memory_space<vmem>>, vector<32x1xf32>
    %4 = vector.broadcast %3 : vector<32x1xf32> to vector<32x256xf32>
    %5 = arith.addf %2, %4 : vector<32x256xf32>
    %6 = math.tanh %5 : vector<32x256xf32>
    %c0_5 = arith.constant 0 : index
    %c0_6 = arith.constant 0 : index
    %c0_7 = arith.constant 0 : index
    %7 = vector.load %arg4[%c0_5, %c0_6, %c0_7] : memref<2x32x32xf32, #tpu.memory_space<vmem>>, vector<1x32x32xf32>
    %8 = vector.shape_cast %7 : vector<1x32x32xf32> to vector<32x32xf32>
    %cst_8 = arith.constant dense<0.000000e+00> : vector<32x256xf32>
    %9 = tpu.matmul %8, %6, %cst_8 {dimension_numbers = #tpu.dot_dimension_numbers<[1], [0], [0], [1], [0, 0, 1, 1], [], []>} : vector<32x32xf32>, vector<32x256xf32>, vector<32x256xf32> -> vector<32x256xf32>
    %c0_9 = arith.constant 0 : index
    %c0_10 = arith.constant 0 : index
    %c0_11 = arith.constant 0 : index
    %10 = vector.load %arg5[%c0_9, %c0_10, %c0_11] : memref<2x32x1xf32, #tpu.memory_space<vmem>>, vector<1x32x1xf32>
    %11 = vector.shape_cast %10 : vector<1x32x1xf32> to vector<32x1xf32>
    %12 = vector.broadcast %11 : vector<32x1xf32> to vector<32x256xf32>
    %13 = arith.addf %9, %12 : vector<32x256xf32>
    %14 = math.tanh %13 : vector<32x256xf32>
    %c1 = arith.constant 1 : index
    %c0_12 = arith.constant 0 : index
    %c0_13 = arith.constant 0 : index
    %15 = vector.load %arg4[%c1, %c0_12, %c0_13] : memref<2x32x32xf32, #tpu.memory_space<vmem>>, vector<1x32x32xf32>
    %16 = vector.shape_cast %15 : vector<1x32x32xf32> to vector<32x32xf32>
    %cst_14 = arith.constant dense<0.000000e+00> : vector<32x256xf32>
    %17 = tpu.matmul %16, %14, %cst_14 {dimension_numbers = #tpu.dot_dimension_numbers<[1], [0], [0], [1], [0, 0, 1, 1], [], []>} : vector<32x32xf32>, vector<32x256xf32>, vector<32x256xf32> -> vector<32x256xf32>
    %c1_15 = arith.constant 1 : index
    %c0_16 = arith.constant 0 : index
    %c0_17 = arith.constant 0 : index
    %18 = vector.load %arg5[%c1_15, %c0_16, %c0_17] : memref<2x32x1xf32, #tpu.memory_space<vmem>>, vector<1x32x1xf32>
    %19 = vector.shape_cast %18 : vector<1x32x1xf32> to vector<32x1xf32>
    %20 = vector.broadcast %19 : vector<32x1xf32> to vector<32x256xf32>
    %21 = arith.addf %17, %20 : vector<32x256xf32>
    %22 = math.tanh %21 : vector<32x256xf32>
    %c0_18 = arith.constant 0 : index
    %c0_19 = arith.constant 0 : index
    %23 = vector.load %arg6[%c0_18, %c0_19] : memref<3x32xf32, #tpu.memory_space<vmem>>, vector<3x32xf32>
    %cst_20 = arith.constant dense<0.000000e+00> : vector<3x256xf32>
    %24 = tpu.matmul %23, %22, %cst_20 {dimension_numbers = #tpu.dot_dimension_numbers<[1], [0], [0], [1], [0, 0, 1, 1], [], []>} : vector<3x32xf32>, vector<32x256xf32>, vector<3x256xf32> -> vector<3x256xf32>
    %c0_21 = arith.constant 0 : index
    %c0_22 = arith.constant 0 : index
    %25 = vector.load %arg7[%c0_21, %c0_22] : memref<3x1xf32, #tpu.memory_space<vmem>>, vector<3x1xf32>
    %26 = vector.broadcast %25 : vector<3x1xf32> to vector<3x256xf32>
    %27 = arith.addf %24, %26 : vector<3x256xf32>
    %c0_23 = arith.constant 0 : index
    %c0_24 = arith.constant 0 : index
    %28 = vector.load %arg8[%c0_23, %c0_24] : memref<3x256xf32, #tpu.memory_space<vmem>>, vector<3x256xf32>
    tpu.vector_store %arg8[%c0_23, %c0_24], %27 {strides = array<i32>} : memref<3x256xf32, #tpu.memory_space<vmem>>, vector<3x256xf32>,
    return
  }
  func.func @transform_0(%arg0: i32) -> (i32, i32) {
    %c0_i32 = arith.constant 0 : i32
    %c0_i32_0 = arith.constant 0 : i32
    return %arg0, %c0_i32 : i32, i32
  }
  func.func @transform_1(%arg0: i32) -> (i32, i32) {
    %c0_i32 = arith.constant 0 : i32
    %c0_i32_0 = arith.constant 0 : i32
    %c0_i32_1 = arith.constant 0 : i32
    return %c0_i32, %c0_i32_0 : i32, i32
  }
  func.func @transform_2(%arg0: i32) -> (i32, i32) {
    %c0_i32 = arith.constant 0 : i32
    %c0_i32_0 = arith.constant 0 : i32
    %c0_i32_1 = arith.constant 0 : i32
    return %c0_i32, %c0_i32_0 : i32, i32
  }
  func.func @transform_3(%arg0: i32) -> (i32, i32, i32) {
    %c0_i32 = arith.constant 0 : i32
    %c0_i32_0 = arith.constant 0 : i32
    %c0_i32_1 = arith.constant 0 : i32
    %c0_i32_2 = arith.constant 0 : i32
    return %c0_i32, %c0_i32_0, %c0_i32_1 : i32, i32, i32
  }
  func.func @transform_4(%arg0: i32) -> (i32, i32, i32) {
    %c0_i32 = arith.constant 0 : i32
    %c0_i32_0 = arith.constant 0 : i32
    %c0_i32_1 = arith.constant 0 : i32
    %c0_i32_2 = arith.constant 0 : i32
    return %c0_i32, %c0_i32_0, %c0_i32_1 : i32, i32, i32
  }
  func.func @transform_5(%arg0: i32) -> (i32, i32) {
    %c0_i32 = arith.constant 0 : i32
    %c0_i32_0 = arith.constant 0 : i32
    %c0_i32_1 = arith.constant 0 : i32
    return %c0_i32, %c0_i32_0 : i32, i32
  }
  func.func @transform_6(%arg0: i32) -> (i32, i32) {
    %c0_i32 = arith.constant 0 : i32
    %c0_i32_0 = arith.constant 0 : i32
    %c0_i32_1 = arith.constant 0 : i32
    return %c0_i32, %c0_i32_0 : i32, i32
  }
  func.func @transform_7(%arg0: i32) -> (i32, i32) {
    %c0_i32 = arith.constant 0 : i32
    %c0_i32_0 = arith.constant 0 : i32
    return %c0_i32, %arg0 : i32, i32
  }
}

</mosaic_0001>

<bundles_post_ra>
// kernel: tpu_custom_call.1
= control target key start
LH: loop header
LB: loop body
LE: loop exit
PB: predicated region body
PF: predicated region fallthrough
CT: control target
= control target key end

     0   :  { %12 = vsyncpa [#allocation3], 0  ;;  %s1679_s0 = inlined_call_operand.vmem [shape: f32[300,8], index: 0, kind: input, shape index: {}]   ;;  %s1680_s1 = inlined_call_operand.vmem [shape: f32[32,8], index: 1, kind: input, shape index: {}]   ;;  %s1681_s2 = inlined_call_operand.vmem [shape: f32[32,1], index: 2, kind: input, shape index: {}]   ;;  %s1682_s3 = inlined_call_operand.vmem [shape: f32[2,32,32], index: 3, kind: input, shape index: {}]   ;;  %s1683_s4 = inlined_call_operand.vmem [shape: f32[2,32,1], index: 4, kind: input, shape index: {}]   ;;  %s1684_s5 = inlined_call_operand.vmem [shape: f32[3,32], index: 5, kind: input, shape index: {}]   ;;  %s1685_s6 = inlined_call_operand.vmem [shape: f32[3,1], index: 6, kind: input, shape index: {}]   ;;  %s1686_s7 = inlined_call_operand.hbm [shape: f32[3,300], index: 7, kind: output, shape index: {}]  }
   0x1   :  { %14 = vsyncpa [#allocation3 + $0x1], 0  ;;  %s1392_s24 = smov 0   ;;  %s1394_s25 = smov 0  }
   0x2   :  { %s1396_s26 = smov 0   ;;  %s1398_s27 = smov 0  }
   0x3 LB: > { %s1413_s28 = sadd.s32 4294967295, %s1347_s27   ;;  %s1013_s29 = sadd.s32 4294967294, %s1347_s27   ;;  %s1347_s27 = sphi %s1398_s27, %s1694_s27   ;;  %s1343_s26 = sphi %s1396_s26, %s1693_s26   ;;  %s1339_s25 = sphi %s1394_s25, %s1692_s25   ;;  %s1335_s24 = sphi %s1392_s24, %s1691_s24  }
   0x4   : > { %s1417_s30 = sadd.s32 1, %s1347_s27   ;;  %s179_s8 = sadd.s32 1, %s1343_s26 }
   0x5   : > { %s176_s9 = ssub.s32 %s1347_s27, %s1417_s30  ;;  %p189_p0 = scmp.ne.s32.totalorder %s1343_s26, %s1339_s25 }
   0x6   : > { %p177_p1 = scmp.eq.s32.totalorder %s176_s9, 0  ;;  %p190_p2 = scmp.eq.s32.totalorder %s1413_s28, 1 }
   0x7   : > { %p195_p3 = scmp.ne.s32.totalorder %s1339_s25, %s1335_s24  ;;  %p196_p4 = scmp.eq.s32.totalorder %s1013_s29, 1 }
   0x8   : > { %s1428_s10 = scalar_select %p177_p1, %s1343_s26, %s179_s8  }
   0x9   : > { %p1430_p5 = por %p190_p2, %p189_p0  ;;  %p1434_p6 = por %p196_p4, %p195_p3 }
   0xa   : > { %p1016_p7 = scmp.ge.s32.totalorder %s1347_s27, 1  ;;  %p249_p8 = scmp.lt.s32.totalorder %s1347_s27, 3 }
   0xc   : > { %p250_p9 = pnand %p1016_p7, %p249_p8 }
   0xd   : > { %s1018_s13 = sshll.u32 (!%p250_p9), %s1413_s28, 5  ;;  %vm364_vm0 = vcmask (!%p250_p9), 64512   ;;  %v1444_v0 = vld [vmem:[%s1680_s1] sm:$0xff] (!%p250_p9)  ;;  %v1349_v1 = vmov (!%p250_p9), 0   ;;  %v342_v3 = vld [vmem:[%s1681_s2 + $0x10] sm:$0xff] (!%p250_p9)  ;;  %v341_v4 = vld [vmem:[%s1681_s2 + $0x8] sm:$0xff] (!%p250_p9) }
   0xe   : > { %253 = sbr.rel (%p250_p9) target bundleno = 1068 (0x42c), region = 48  ;;  %p290_p10 = scmp.lt.s32.totalorder (!%p250_p9), %s1018_s13, 37  ;;  %1115 = vmatprep.mubr.msk.f32.mxu0 (!%p250_p9), %vm364_vm0, %v1444_v0  ;;  %1235 = vset.pattern.permute.xlu0 (!%p250_p9), %v1349_v1  ;;  %v340_v2 = vld [vmem:[%s1681_s2] sm:$0xff] (!%p250_p9)  ;;  %v343_v5 = vld [vmem:[%s1681_s2 + $0x18] sm:$0xff] (!%p250_p9)  ;;  %vm1467_vm1 = vmpackc.low (!%p250_p9), %vm364_vm0, %vm364_vm0  ;;  %vm598_vm2 = vcmask (!%p250_p9), 261120  }
   0xf   : > { %346 = vperm.xlu0 (!%p250_p9), %1235, %v340_v2   ;;  %1236 = vset.pattern.permute.xlu1 (!%p250_p9), %v1349_v1  ;;  %v574_v7 = vld [vmem:[%s1683_s4] sm:$0xff] (!%p250_p9)  ;;  %v575_v8 = vld [vmem:[%s1683_s4 + $0x8] sm:$0xff] (!%p250_p9)  ;;  %v576_v18 = vld [vmem:[%s1683_s4 + $0x10] sm:$0xff] (!%p250_p9) }
  0x10   : > { %356 = vperm.xlu1 (!%p250_p9), %1236, %v342_v3   ;;  %v577_v21 = vld [vmem:[%s1683_s4 + $0x18] sm:$0xff] (!%p250_p9)  ;;  %v1064_v25 = vld [vmem:[%s1683_s4 + $0x20] sm:$0xff] (!%p250_p9)  ;;  %v1065_v27 = vld [vmem:[%s1683_s4 + $0x28] sm:$0xff] (!%p250_p9) }
  0x11   : > { %v1066_v28 = vld [vmem:[%s1683_s4 + $0x30] sm:$0xff] (!%p250_p9)  ;;  %v1067_v31 = vld [vmem:[%s1683_s4 + $0x38] sm:$0xff] (!%p250_p9)  ;;  %v848_v35 = vld [vmem:[%s1685_s6] sm:$0x7] (!%p250_p9) }
  0x12   : > { %v337_v1 = vld [vmem:[%s1680_s1 + $0x8] sm:$0xff] (!%p250_p9)  ;;  %v338_v2 = vld [vmem:[%s1680_s1 + $0x10] sm:$0xff] (!%p250_p9)  ;;  %v339_v3 = vld [vmem:[%s1680_s1 + $0x18] sm:$0xff] (!%p250_p9) }
  0x13   : > { %351 = vperm.xlu0 (!%p250_p9), %1235, %v341_v4  }
  0x14   : > { %361 = vperm.xlu1 (!%p250_p9), %1236, %v343_v5  }
  0x15   : > { %s1696_s13 = smov (!%p290_p10, %s1018_s13), 37  ;;  %s1074_s19 = sshll.u32 (%p1430_p5), %s1413_s28, 1 }
  0x16   : > { %s1019_s29 = sshll.u32 %s1696_s13, 3  ;;  %s282_s13 = sand.u32 1, %s1339_s25  }
  0x17   : > { %s1463_s14 = scalar_lea.vmem %s1679_s0, %s1019_s29  ;;  %580 = vperm.xlu0 %1235, %v574_v7   ;;  %s1017_s16 = sshll.u32 %s282_s13, 3 }
  0x18   : > { %v320_v9 = vld [vmem:[%s1463_s14 + $0x80] sm:$0xff]  ;;  %v321_v10 = vld [vmem:[%s1463_s14 + $0x88] sm:$0xff]  ;;  %v322_v14 = vld [vmem:[%s1463_s14 + $0x90] sm:$0xff]  ;;  %585 = vperm.xlu1 %1236, %v575_v8   ;;  %s284_s17 = scalar_lea.vmem [#allocation2], %s1017_s16  ;;  %s1625_s18 = scalar_lea.sflag [#allocation3], %s282_s13 }
  0x19   : > { %v304_v11 = vld [vmem:[%s1463_s14] sm:$0xff]  ;;  %v1123_v12 = vpack.c.bf16 %v321_v10, %v320_v9  ;;  %v305_v13 = vld [vmem:[%s1463_s14 + $0x8] sm:$0xff]  ;;  %v323_v15 = vld [vmem:[%s1463_s14 + $0x98] sm:$0xff]  ;;  %s942_s20 = ssub.s32 (%p1430_p5), 3, %s1074_s19 }
  0x1a   : > { %v1126_v16 = vpack.c.bf16 %v305_v13, %v304_v11  ;;  %v1129_v17 = vpack.c.bf16 %v323_v15, %v322_v14  ;;  %v306_v19 = vld [vmem:[%s1463_s14 + $0x10] sm:$0xff]  ;;  %v307_v20 = vld [vmem:[%s1463_s14 + $0x18] sm:$0xff]  ;;  %v324_v22 = vld [vmem:[%s1463_s14 + $0xa0] sm:$0xff]  ;;  %p943_p11 = scmp.lt.s32.totalorder (%p1430_p5), %s942_s20, 2 }
  0x1b   : > { %1125 = vmatprep.subr.msk.bf16.mxu0 %vm1467_vm1, %v1123_v12  ;;  %v325_v23 = vld [vmem:[%s1463_s14 + $0xa8] sm:$0xff]  ;;  %590 = vperm.xlu0 %1235, %v576_v18   ;;  %v1132_v24 = vpack.c.bf16 %v307_v20, %v306_v19  ;;  %v308_v29 = vld [vmem:[%s1463_s14 + $0x20] sm:$0xff]  ;;  %v326_v32 = vld [vmem:[%s1463_s14 + $0xb0] sm:$0xff] }
  0x1c   : > { %1128 = vmatpush3.bf16.xpose.msk.msra.mxu0 %vm1467_vm1, %v1126_v16  ;;  %595 = vperm.xlu1 %1236, %v577_v21   ;;  %v1135_v26 = vpack.c.bf16 %v325_v23, %v324_v22  ;;  %v309_v30 = vld [vmem:[%s1463_s14 + $0x28] sm:$0xff]  ;;  %v327_v33 = vld [vmem:[%s1463_s14 + $0xb8] sm:$0xff]  ;;  %v310_v37 = vld [vmem:[%s1463_s14 + $0x30] sm:$0xff] }
  0x1d   : > { %1131 = vmatprep.subr.msk.bf16.mxu0 %vm1467_vm1, %v1129_v17  ;;  %v1138_v34 = vpack.c.bf16 %v309_v30, %v308_v29  ;;  %v1141_v36 = vpack.c.bf16 %v327_v33, %v326_v32  ;;  %v311_v38 = vld [vmem:[%s1463_s14 + $0x38] sm:$0xff]  ;;  %v328_v39 = vld [vmem:[%s1463_s14 + $0xc0] sm:$0xff]  ;;  %v329_v40 = vld [vmem:[%s1463_s14 + $0xc8] sm:$0xff] }
  0x1e   : > { %v1144_v41 = vpack.c.bf16 %v311_v38, %v310_v37  ;;  %v1147_v42 = vpack.c.bf16 %v329_v40, %v328_v39  ;;  %v312_v43 = vld [vmem:[%s1463_s14 + $0x40] sm:$0xff]  ;;  %v313_v44 = vld [vmem:[%s1463_s14 + $0x48] sm:$0xff]  ;;  %v330_v45 = vld [vmem:[%s1463_s14 + $0xd0] sm:$0xff] }
  0x1f   : > { %720 = vperm.xlu0 %1235, %v1064_v25   ;;  %v331_v46 = vld [vmem:[%s1463_s14 + $0xd8] sm:$0xff]  ;;  %v1150_v47 = vpack.c.bf16 %v313_v44, %v312_v43  ;;  %v314_v49 = vld [vmem:[%s1463_s14 + $0x50] sm:$0xff]  ;;  %v332_v51 = vld [vmem:[%s1463_s14 + $0xe0] sm:$0xff] }
  0x20   : > { %725 = vperm.xlu1 %1236, %v1065_v27   ;;  %v1153_v48 = vpack.c.bf16 %v331_v46, %v330_v45  ;;  %v315_v50 = vld [vmem:[%s1463_s14 + $0x58] sm:$0xff]  ;;  %v333_v52 = vld [vmem:[%s1463_s14 + $0xe8] sm:$0xff]  ;;  %v316_v55 = vld [vmem:[%s1463_s14 + $0x60] sm:$0xff] }
  0x21   : > { %v1156_v53 = vpack.c.bf16 %v315_v50, %v314_v49  ;;  %v1159_v54 = vpack.c.bf16 %v333_v52, %v332_v51  ;;  %v317_v56 = vld [vmem:[%s1463_s14 + $0x68] sm:$0xff]  ;;  %v334_v57 = vld [vmem:[%s1463_s14 + $0xf0] sm:$0xff]  ;;  %v335_v58 = vld [vmem:[%s1463_s14 + $0xf8] sm:$0xff] }
  0x22   : > { %v1162_v59 = vpack.c.bf16 %v317_v56, %v316_v55  ;;  %v1165_v60 = vpack.c.bf16 %v335_v58, %v334_v57  ;;  %v318_v61 = vld [vmem:[%s1463_s14 + $0x70] sm:$0xff]  ;;  %v319_v62 = vld [vmem:[%s1463_s14 + $0x78] sm:$0xff]  ;;  %v571_v37 = vld [vmem:[%s1682_s3 + $0x8] sm:$0xff] }
  0x23   : > { %730 = vperm.xlu0 %1235, %v1066_v28   ;;  %v1168_v63 = vpack.c.bf16 %v319_v62, %v318_v61  ;;  %v572_v38 = vld [vmem:[%s1682_s3 + $0x10] sm:$0xff]  ;;  %v573_v39 = vld [vmem:[%s1682_s3 + $0x18] sm:$0xff] }
  0x24   : > { %1134 = vmatpush3.bf16.xpose.msk.msra.mxu0 %vm1467_vm1, %v1132_v24  ;;  %735 = vperm.xlu1 %1236, %v1067_v31  }
  0x25   : > { %1137 = vmatprep.subr.msk.bf16.mxu0 %vm1467_vm1, %v1135_v26 }
  0x27   : > { %851 = vperm.xlu0 %1235, %v848_v35  }
  0x2c   : > { %1140 = vmatpush3.bf16.xpose.msk.msra.mxu0 %vm1467_vm1, %v1138_v34 }
  0x2d   : > { %1143 = vmatprep.subr.msk.bf16.mxu0 %vm1467_vm1, %v1141_v36  ;;  %v570_v36 = vld [vmem:[%s1682_s3] sm:$0xff] }
  0x34   : > { %1146 = vmatpush3.bf16.xpose.msk.msra.mxu0 %vm1467_vm1, %v1144_v41 }
  0x35   : > { %1149 = vmatprep.subr.msk.bf16.mxu0 %vm1467_vm1, %v1147_v42 }
  0x3c   : > { %1152 = vmatpush3.bf16.xpose.msk.msra.mxu0 %vm1467_vm1, %v1150_v47 }
  0x3d   : > { %1155 = vmatprep.subr.msk.bf16.mxu0 %vm1467_vm1, %v1153_v48 }
  0x44   : > { %1158 = vmatpush3.bf16.xpose.msk.msra.mxu0 %vm1467_vm1, %v1156_v53 }
  0x45   : > { %1161 = vmatprep.subr.msk.bf16.mxu0 %vm1467_vm1, %v1159_v54 }
  0x4c   : > { %1164 = vmatpush3.bf16.xpose.msk.msra.mxu0 %vm1467_vm1, %v1162_v59 }
  0x4d   : > { %1167 = vmatprep.subr.msk.bf16.mxu0 %vm1467_vm1, %v1165_v60 }
  0x54   : > { %1170 = vmatpush3.bf16.xpose.msk.msra.mxu0 %vm1467_vm1, %v1168_v63 }
  0x5b   : > { %1116 = vmatmul.mubr.msk.f32.vlgmr.msra.gmra.mrb[0].mxu0 %vm364_vm0, %v1444_v0  ;;  %v1350_v0 = vmov 0.0  }
  0x5c   : > { %1117 = vmatprep.mubr.msk.f32.mxu0 %vm364_vm0, %v337_v1  ;;  %675 = vmatprep.mubr.f32.mxu1 %v1350_v0 }
  0x5f   : > { %1118 = vmatmul.mubr.msk.f32.gmra.mrb[2].mxu0 %vm364_vm0, %v337_v1 }
  0x60   : > { %1119 = vmatprep.mubr.msk.f32.mxu0 %vm364_vm0, %v338_v2 }
  0x63   : > { %1120 = vmatmul.mubr.msk.f32.gmra.mrb[4].mxu0 %vm364_vm0, %v338_v2 }
  0x64   : > { %1121 = vmatprep.mubr.msk.f32.mxu0 %vm364_vm0, %v339_v3 }
  0x67   : > { %1122 = vmatmul.mubr.msk.f32.gmra.mrb[6].mxu0 %vm364_vm0, %v339_v3 }
  0x8e   : > { %v347_v4 = vpop.permute.xlu0 %346 }
  0x8f   : > { %v357_v13 = vpop.permute.xlu1 %356 }
  0x92   : > { %v352_v9 = vpop.permute.xlu0 %351 }
  0x93   : > { %v362_v19 = vpop.permute.xlu1 %361 }
  0x96   : > { %v581_v40 = vpop.permute.xlu0 %580 }
  0x97   : > { %v586_v45 = vpop.permute.xlu1 %585 }
  0x9a   : > { %v591_v50 = vpop.permute.xlu0 %590 }
  0x9b   : > { %v596_v55 = vpop.permute.xlu1 %595 }
 0x12e   : > { %v539_v5 = vpop.f32.mrb[0].mxu0 }
 0x12f   : > { %v540_v6 = vadd.f32 %v539_v5, %v347_v4  ;;  %v541_v7 = vpop.f32.mrb[1].mxu0 }
 0x130   : > { %v542_v8 = vadd.f32 %v541_v7, %v347_v4 }
 0x131   : > { %1237 = vtanh.f32 %v540_v6 }
 0x132   : > { %v545_v10 = vpop.f32.mrb[2].mxu0  ;;  %1239 = vtanh.f32 %v542_v8 }
 0x133   : > { %v546_v11 = vadd.f32 %v545_v10, %v352_v9  ;;  %v547_v12 = vpop.f32.mrb[3].mxu0  ;;  %v1061_v10 = vld [vmem:[%s1682_s3 + $0x28] sm:$0xff] }
 0x134   : > { %v548_v14 = vadd.f32 %v547_v12, %v352_v9  ;;  %v1060_v9 = vld [vmem:[%s1682_s3 + $0x20] sm:$0xff]  ;;  %v1063_v12 = vld [vmem:[%s1682_s3 + $0x38] sm:$0xff] }
 0x135   : > { %1241 = vtanh.f32 %v546_v11  ;;  %v1062_v11 = vld [vmem:[%s1682_s3 + $0x30] sm:$0xff] }
 0x136   : > { %1243 = vtanh.f32 %v548_v14  ;;  %v551_v15 = vpop.f32.mrb[4].mxu0 }
 0x137   : > { %v552_v16 = vadd.f32 %v551_v15, %v357_v13  ;;  %v553_v17 = vpop.f32.mrb[5].mxu0 }
 0x138   : > { %v554_v18 = vadd.f32 %v553_v17, %v357_v13  ;;  %v721_v13 = vpop.permute.xlu0 %720 }
 0x139   : > { %1245 = vtanh.f32 %v552_v16 }
 0x13a   : > { %v557_v20 = vpop.f32.mrb[6].mxu0  ;;  %1247 = vtanh.f32 %v554_v18  ;;  %v726_v18 = vpop.permute.xlu1 %725 }
 0x13b   : > { %v558_v21 = vadd.f32 %v557_v20, %v362_v19  ;;  %v559_v22 = vpop.f32.mrb[7].mxu0  ;;  %v1238_v24 = vpop.eup %1237 }
 0x13c   : > { %v560_v23 = vadd.f32 %v559_v22, %v362_v19  ;;  %v1240_v25 = vpop.eup %1239 }
 0x13d   : > { %1249 = vtanh.f32 %v558_v21 }
 0x13e   : > { %1251 = vtanh.f32 %v560_v23  ;;  %v731_v23 = vpop.permute.xlu0 %730 }
 0x13f   : > { %v1242_v26 = vpop.eup %1241 }
 0x140   : > { %v1244_v27 = vpop.eup %1243  ;;  %v1173_v28 = vpack.c.bf16 %v1242_v26, %v1238_v24 }
 0x141   : > { %v1171_v29 = vpack.c.bf16 %v1244_v27, %v1240_v25 }
 0x143   : > { %1172 = vmatprep.subr.bf16.mxu1 %v1171_v29  ;;  %v1246_v30 = vpop.eup %1245 }
 0x144   : > { %1174 = vmatpush1.bf16.msra.mxu1 %v1173_v28  ;;  %v1248_v31 = vpop.eup %1247 }
 0x147   : > { %v1250_v32 = vpop.eup %1249 }
 0x148   : > { %v1252_v33 = vpop.eup %1251  ;;  %v1177_v34 = vpack.c.bf16 %v1250_v32, %v1246_v30 }
 0x149   : > { %v1175_v35 = vpack.c.bf16 %v1252_v33, %v1248_v31 }
 0x14b   : > { %1176 = vmatprep.subr.bf16.mxu1 %v1175_v35 }
 0x14c   : > { %1178 = vmatpush1.bf16.msra.mxu1 %v1177_v34 }
 0x14f   : > { %1056 = vmatmul.mubr.msk.f32.vlgmr.msra.gmra.mrb[0].mxu1 %vm598_vm2, %v570_v36 }
 0x150   : > { %681 = vmatprep.mubr.f32.mxu1 %v1350_v0 }
 0x153   : > { %1057 = vmatmul.mubr.msk.f32.gmra.mrb[2].mxu1 %vm598_vm2, %v571_v37 }
 0x154   : > { %687 = vmatprep.mubr.f32.mxu1 %v1350_v0 }
 0x157   : > { %1058 = vmatmul.mubr.msk.f32.gmra.mrb[4].mxu1 %vm598_vm2, %v572_v38 }
 0x158   : > { %693 = vmatprep.mubr.f32.mxu1 %v1350_v0 }
 0x15b   : > { %1059 = vmatmul.mubr.msk.f32.gmra.mrb[6].mxu1 %vm598_vm2, %v573_v39 }
 0x15c   : > { %814 = vmatprep.mubr.f32.mxu1 %v1350_v0 }
 0x222   : > { %v677_v41 = vpop.f32.mrb[0].mxu1 }
 0x223   : > { %v678_v42 = vadd.f32 %v677_v41, %v581_v40  ;;  %v679_v43 = vpop.f32.mrb[1].mxu1 }
 0x224   : > { %v680_v44 = vadd.f32 %v679_v43, %v581_v40 }
 0x225   : > { %1253 = vtanh.f32 %v678_v42 }
 0x226   : > { %v683_v46 = vpop.f32.mrb[2].mxu1  ;;  %1255 = vtanh.f32 %v680_v44  ;;  %v847_v44 = vld [vmem:[%s1684_s5] sm:$0x7] }
 0x227   : > { %v684_v47 = vadd.f32 %v683_v46, %v586_v45  ;;  %v685_v48 = vpop.f32.mrb[3].mxu1 }
 0x228   : > { %v686_v49 = vadd.f32 %v685_v48, %v586_v45  ;;  %v852_v45 = vpop.permute.xlu0 %851 }
 0x229   : > { %1257 = vtanh.f32 %v684_v47 }
 0x22a   : > { %1259 = vtanh.f32 %v686_v49  ;;  %v689_v51 = vpop.f32.mrb[4].mxu1 }
 0x22b   : > { %v690_v52 = vadd.f32 %v689_v51, %v591_v50  ;;  %v691_v53 = vpop.f32.mrb[5].mxu1 }
 0x22c   : > { %v692_v54 = vadd.f32 %v691_v53, %v591_v50 }
 0x22d   : > { %1261 = vtanh.f32 %v690_v52 }
 0x22e   : > { %v695_v56 = vpop.f32.mrb[6].mxu1  ;;  %1263 = vtanh.f32 %v692_v54 }
 0x22f   : > { %v696_v57 = vadd.f32 %v695_v56, %v596_v55  ;;  %v697_v58 = vpop.f32.mrb[7].mxu1  ;;  %v1254_v60 = vpop.eup %1253 }
 0x230   : > { %v698_v59 = vadd.f32 %v697_v58, %v596_v55  ;;  %v1256_v61 = vpop.eup %1255 }
 0x231   : > { %1265 = vtanh.f32 %v696_v57 }
 0x232   : > { %1267 = vtanh.f32 %v698_v59 }
 0x233   : > { %v1258_v62 = vpop.eup %1257 }
 0x234   : > { %v1260_v63 = vpop.eup %1259  ;;  %v1181_v1 = vpack.c.bf16 %v1258_v62, %v1254_v60 }
 0x235   : > { %v1179_v2 = vpack.c.bf16 %v1260_v63, %v1256_v61 }
 0x237   : > { %1180 = vmatprep.subr.bf16.mxu1 %v1179_v2  ;;  %v1262_v3 = vpop.eup %1261 }
 0x238   : > { %1182 = vmatpush1.bf16.msra.mxu1 %v1181_v1  ;;  %v1264_v4 = vpop.eup %1263 }
 0x23b   : > { %v1266_v5 = vpop.eup %1265 }
 0x23c   : > { %v1268_v6 = vpop.eup %1267  ;;  %v1185_v7 = vpack.c.bf16 %v1266_v5, %v1262_v3 }
 0x23d   : > { %v1183_v8 = vpack.c.bf16 %v1268_v6, %v1264_v4 }
 0x23f   : > { %1184 = vmatprep.subr.bf16.mxu1 %v1183_v8 }
 0x240   : > { %1186 = vmatpush1.bf16.msra.mxu1 %v1185_v7 }
 0x243   : > { %1068 = vmatmul.mubr.msk.f32.vlgmr.msra.gmra.mrb[8].mxu1 %vm598_vm2, %v1060_v9 }
 0x244   : > { %820 = vmatprep.mubr.f32.mxu1 %v1350_v0 }
 0x247   : > { %1069 = vmatmul.mubr.msk.f32.gmra.mrb[10].mxu1 %vm598_vm2, %v1061_v10 }
 0x248   : > { %826 = vmatprep.mubr.f32.mxu1 %v1350_v0 }
 0x24b   : > { %1070 = vmatmul.mubr.msk.f32.gmra.mrb[12].mxu1 %vm598_vm2, %v1062_v11 }
 0x24c   : > { %832 = vmatprep.mubr.f32.mxu1 %v1350_v0 }
 0x24f   : > { %1071 = vmatmul.mubr.msk.f32.gmra.mrb[14].mxu1 %vm598_vm2, %v1063_v12 }
 0x250   : > { %921 = vmatprep.mubr.f32.mxu1 %v1350_v0  ;;  %v736_v0 = vpop.permute.xlu1 %735 }
 0x316   : > { %v816_v14 = vpop.f32.mrb[8].mxu1 }
 0x317   : > { %v817_v15 = vadd.f32 %v816_v14, %v721_v13  ;;  %v818_v16 = vpop.f32.mrb[9].mxu1 }
 0x318   : > { %v819_v17 = vadd.f32 %v818_v16, %v721_v13 }
 0x319   : > { %1269 = vtanh.f32 %v817_v15 }
 0x31a   : > { %v822_v19 = vpop.f32.mrb[10].mxu1  ;;  %1271 = vtanh.f32 %v819_v17 }
 0x31b   : > { %v823_v20 = vadd.f32 %v822_v19, %v726_v18  ;;  %v824_v21 = vpop.f32.mrb[11].mxu1 }
 0x31c   : > { %v825_v22 = vadd.f32 %v824_v21, %v726_v18 }
 0x31d   : > { %1273 = vtanh.f32 %v823_v20 }
 0x31e   : > { %1275 = vtanh.f32 %v825_v22  ;;  %v828_v24 = vpop.f32.mrb[12].mxu1 }
 0x31f   : > { %v829_v25 = vadd.f32 %v828_v24, %v731_v23  ;;  %v830_v26 = vpop.f32.mrb[13].mxu1 }
 0x320   : > { %v831_v27 = vadd.f32 %v830_v26, %v731_v23 }
 0x321   : > { %1277 = vtanh.f32 %v829_v25 }
 0x322   : > { %v834_v28 = vpop.f32.mrb[14].mxu1  ;;  %1279 = vtanh.f32 %v831_v27 }
 0x323   : > { %v835_v29 = vadd.f32 %v834_v28, %v736_v0  ;;  %v836_v30 = vpop.f32.mrb[15].mxu1  ;;  %v1270_v32 = vpop.eup %1269 }
 0x324   : > { %v837_v31 = vadd.f32 %v836_v30, %v736_v0  ;;  %v1272_v33 = vpop.eup %1271 }
 0x325   : > { %1281 = vtanh.f32 %v835_v29 }
 0x326   : > { %1283 = vtanh.f32 %v837_v31 }
 0x327   : > { %v1274_v34 = vpop.eup %1273 }
 0x328   : > { %v1276_v35 = vpop.eup %1275  ;;  %v1189_v36 = vpack.c.bf16 %v1274_v34, %v1270_v32 }
 0x329   : > { %v1187_v37 = vpack.c.bf16 %v1276_v35, %v1272_v33 }
 0x32b   : > { %1188 = vmatprep.subr.bf16.mxu1 %v1187_v37  ;;  %v1278_v38 = vpop.eup %1277 }
 0x32c   : > { %1190 = vmatpush1.bf16.msra.mxu1 %v1189_v36  ;;  %v1280_v39 = vpop.eup %1279 }
 0x32f   : > { %v1282_v40 = vpop.eup %1281 }
 0x330   : > { %v1284_v41 = vpop.eup %1283  ;;  %v1193_v42 = vpack.c.bf16 %v1282_v40, %v1278_v38 }
 0x331   : > { %v1191_v43 = vpack.c.bf16 %v1284_v41, %v1280_v39 }
 0x333   : > { %1192 = vmatprep.subr.bf16.mxu1 %v1191_v43 }
 0x334   : > { %1194 = vmatpush1.bf16.msra.mxu1 %v1193_v42 }
 0x337   : > { %1072 = vmatmul.mubr.msk.f32.vlgmr.msra.gmra.mrb[16].mxu1 %vm598_vm2, %v847_v44 }
 0x40a   : > { %v923_v46 = vpop.f32.mrb[16].mxu1  ;;  %940 = sbr.rel (!%p1430_p5) target bundleno = 1068 (0x42c), region = 52 }
 0x40b   : > { %v924_v47 = vadd.f32 %v923_v46, %v852_v45  ;;  %v925_v48 = vpop.f32.mrb[17].mxu1 }
 0x40c   : > { %v926_v49 = vadd.f32 %v925_v48, %v852_v45 }
 0x40e   : > { %v930_v50 = vcombine.low %v924_v47, %v926_v49 }
 0x410   : > { %932 = vst [vmem:[%s284_s17] sm:$0x77] %v930_v50 }
 0x411   : > { %s1698_s20 = smov (!%p943_p11, %s942_s20), 2 }
 0x412   : > { %s1630_s21 = sshll.u32 %s1698_s20, 6 }
 0x413   : > { %s947_s22 = ssub.s32 128, %s1630_s21 }
 0x414   : > { %948 = vsyncadd %s1625_s18, %s947_s22  ;;  %p1076_p12 = scmp.ne.s32.totalorder %s1630_s21, 0  ;;  %s1082_s14 = sshll.u32 %s1413_s28, 7 }
 0x415   : > { %s1639_s29 = scalar_lea.hbm %s1686_s7, %s1082_s14  ;;  %s954_s8 = sshll.u32 %s284_s17, 4  ;;  %s955_s8 = int_to_ptr.vmem [resolvable:$true] %s954_s8 }
 0x416   : > { %s1285_s9 = scalar_lea.vmem %s955_s8, %s1630_s21  ;;  %s1351_s15 = smov [#allocation2]  }
 0x417   : > { %p1286_p13 = scmp.ne.s32.totalorder %s955_s8, %s1285_s9  ;;  %s1289_s13 = sshll.u32 %s1351_s15, 4  ;;  %s1290_s13 = int_to_ptr.vmem [resolvable:$false] %s1289_s13 }
 0x418   : > { %s1291_s16 = scalar_lea.vmem %s1290_s13, 256  ;;  %p1292_p2 = scmp.lt.s32.totalorder %s955_s8, %s1290_s13 }
 0x419   : > { %p1287_p0 = pnand %p1286_p13, %p1076_p12  ;;  %p1293_p3 = scmp.lt.s32.totalorder %s1291_s16, %s1285_s9 }
 0x41b   : > { %p1288_p1 = pneg %p1287_p0  ;;  %p1294_p4 = por %p1293_p3, %p1292_p2 }
 0x41d   : > { %p1295_p5 = pnand %p1294_p4, %p1288_p1 }
 0x41f   : > { %1298 = shalt.err (!%p1295_p5)
}
 0x420   : > { %s1299_s28 = scalar_lea.hbm %s1639_s29, %s1630_s21  ;;  %s1303_s20 = scalar_lea.hbm %s1686_s7, 192 }
 0x421   : > { %p1300_p7 = scmp.ne.s32.totalorder %s1639_s29, %s1299_s28  ;;  %p1304_p10 = scmp.lt.u32.totalorder %s1639_s29, %s1686_s7 }
 0x422   : > { %p1305_p11 = scmp.lt.u32.totalorder %s1303_s20, %s1299_s28  ;;  %p1307_p0 = scmp.lt.u32.totalorder %s1299_s28, %s1639_s29 }
 0x423   : > { %p1301_p8 = pnand %p1300_p7, %p1076_p12 }
 0x424   : > { %p1306_p13 = por %p1305_p11, %p1304_p10 }
 0x425   : > { %p1302_p9 = pneg %p1301_p8 }
 0x426   : > { %p1308_p1 = por %p1307_p0, %p1306_p13 }
 0x428   : > { %p1309_p2 = pnand %p1308_p1, %p1302_p9 }
 0x42a   : > { %1312 = shalt.err (!%p1309_p2)
}
 0x42b   : > { %957 = dma.vmem_to_hbm [thread:$0]  (%p1076_p12), %s955_s8, %s1630_s21, %s1639_s29, %s1625_s18  }
 0x42c PF: > { %p1200_p3 = scmp.ge.s32.totalorder %s1347_s27, 2  ;;  %s966_s23 = sand.u32 1, %s1335_s24  }
 0x42d   : > { %s967_s11 = scalar_lea.sflag [#allocation3], %s966_s23 }
 0x42e   : > { %p1197_p4 = pnand %p1200_p3, %p1434_p6 }
 0x430   : > { %1330 = dma.done.wait (!%p1197_p4), %s967_s11, 128  }
 0x431   : > { %1332 = vsyncadd (!%p1197_p4), %s967_s11, 4294967168  ;;  %p17_p5 = scmp.ge.s32.totalorder %s1417_s30, 4   ;;  %s1691_s24 = smov %s1339_s25 }
 0x432   : > { %s1692_s25 = smov %s1343_s26  ;;  %s1693_s26 = smov %s1428_s10 }
 0x433   : > { %s1694_s27 = smov %s1417_s30  ;;  %19 = sbr.rel (!%p17_p5) target bundleno = 3 (0x3), region = 85 }
 0x43a   :  { %972 = vsyncpa [#allocation3], 1 }
 0x43b   :  { %974 = vsyncpa [#allocation3 + $0x1], 1 }

</bundles_post_ra>
